<compile_context>
chip_gen: v5e
topology: v5e:2x2
jax: 0.10.0
libtpu: 0.0.40
codegen_flags: <defaults>
</compile_context>

<pallas_src>
import jax
import jax.numpy as jnp
from jax.experimental import pallas as pl
from jax.experimental.pallas import tpu as pltpu

BATCH = 2
SEQ = 8
DIM = 32          # model dim
HID = 4 * DIM     # mlp hidden dim = 128

_SMALL_ROWS = 512     # below this, a single gridless call is launch-bound anyway
_ROW_TILE = 256       # large-batch row tile (multiple of 8 sublanes)


def mlp_kernel(x_ref, wuv_ref, wo_ref, y_ref):
    x = x_ref[...]                                                        # (rows, DIM)
    # fused u|v projection: one 256-lane MXU push (v6e/v7x), two 128-wide on v5e
    uv = jnp.dot(x, wuv_ref[...], preferred_element_type=jnp.float32)     # (rows, 2*HID)
    u = uv[:, :HID]                                                       # lane-aligned split at 128
    v = uv[:, HID:]
    h = u * (v * jax.nn.sigmoid(v))                                       # u * silu(v); dropout = identity (eval)
    y_ref[...] = jnp.dot(h, wo_ref[...],
                         preferred_element_type=jnp.float32).astype(y_ref.dtype)


def mlp(x, w_uv, w_o):
    """x: (B, T, DIM); w_uv: (DIM, 2*HID) fused [u|v]; w_o: (HID, DIM) -> (B, T, DIM)."""
    Bn, Tn, Cn = x.shape
    rows = Bn * Tn
    x2 = x.reshape(rows, Cn)                 # wrapper-side flatten: free layout plumbing

    vmem_full = pl.BlockSpec(memory_space=pltpu.MemorySpace.VMEM)

    if rows <= _SMALL_ROWS:
        # Gridless path: whole problem is one kernel invocation, all operands live
        # in VMEM once, no pipeline machinery.
        y2 = pl.pallas_call(
            mlp_kernel,
            out_shape=jax.ShapeDtypeStruct((rows, Cn), x.dtype),
            in_specs=[vmem_full, vmem_full, vmem_full],
            out_specs=vmem_full,
        )(x2, w_uv, w_o)
    else:
        # Large-batch path: tile activation rows; weights stay as untiled,
        # single-copy full-array VMEM refs (no double buffering of invariants).
        pad = (-rows) % _ROW_TILE
        if pad:
            x2 = jnp.pad(x2, ((0, pad), (0, 0)))
        n_tiles = (rows + pad) // _ROW_TILE
        y2 = pl.pallas_call(
            mlp_kernel,
            out_shape=jax.ShapeDtypeStruct((rows + pad, Cn), x.dtype),
            grid_spec=pltpu.PrefetchScalarGridSpec(
                num_scalar_prefetch=0,
                grid=(n_tiles,),
                in_specs=[
                    pl.BlockSpec((_ROW_TILE, Cn), lambda i: (i, 0)),   # activations
                    vmem_full,                                         # fused [wu | wv], resident once
                    vmem_full,                                         # wo, resident once
                ],
                out_specs=pl.BlockSpec((_ROW_TILE, Cn), lambda i: (i, 0)),
            ),
            compiler_params=pltpu.CompilerParams(
                dimension_semantics=("parallel",)),
        )(x2, w_uv, w_o)
        y2 = y2[:rows]

    return y2.reshape(Bn, Tn, Cn)


# ---------------- pure-JAX reference (mirrors the torch forward, eval mode) ----------------
def mlp_ref(x, w_u, w_v, w_o):
    u = x @ w_u
    v = x @ w_v
    return (u * (v * jax.nn.sigmoid(v))) @ w_o


if __name__ == "__main__":
    key = jax.random.PRNGKey(0)
    k0, k1, k2, k3 = jax.random.split(key, 4)

    # weights stored as (in, out): y = x @ W  <=>  torch's x @ W_torch.T with W_torch = W.T
    w_u = 0.02 * jax.random.normal(k0, (DIM, HID), jnp.float32)
    w_v = 0.02 * jax.random.normal(k1, (DIM, HID), jnp.float32)
    w_o = 0.02 * jax.random.normal(k2, (HID, DIM), jnp.float32)
    w_uv = jnp.concatenate([w_u, w_v], axis=1)        # fused (DIM, 2*HID) = (32, 256)

    x = jax.random.normal(k3, (BATCH, SEQ, DIM), jnp.float32)

    # TODO(synk): nn.Dropout is modeled as identity (eval/inference); training parity
    # would need an in-kernel pltpu.prng_seed / prng_random_bits mask.
    y = mlp(x, w_uv, w_o)
    jax.block_until_ready(y)

    y_ref = mlp_ref(x, w_u, w_v, w_o)
    assert jnp.allclose(y, y_ref, atol=1e-4, rtol=1e-4), "output mismatch"

    print("KERNEL_OK")
</pallas_src>

<mosaic_0001>
module attributes {stable_mosaic.version = 11 : i64} {
  func.func @mlp_kernel(%arg0: memref<16x32xf32, #tpu.memory_space<vmem>>, %arg1: memref<32x256xf32, #tpu.memory_space<vmem>>, %arg2: memref<128x32xf32, #tpu.memory_space<vmem>>, %arg3: memref<16x32xf32, #tpu.memory_space<vmem>>) attributes {dimension_semantics = [], scalar_prefetch = 0 : i64, scratch_operands = 0 : i64, tpu.core_type = #tpu.core_type<tc>} {
    %c0 = arith.constant 0 : index
    %c0_0 = arith.constant 0 : index
    %0 = vector.load %arg0[%c0, %c0_0] : memref<16x32xf32, #tpu.memory_space<vmem>>, vector<16x32xf32>
    %c0_1 = arith.constant 0 : index
    %c0_2 = arith.constant 0 : index
    %1 = vector.load %arg1[%c0_1, %c0_2] : memref<32x256xf32, #tpu.memory_space<vmem>>, vector<32x256xf32>
    %cst = arith.constant dense<0.000000e+00> : vector<16x256xf32>
    %2 = tpu.matmul %0, %1, %cst {dimension_numbers = #tpu.dot_dimension_numbers<[1], [0], [0], [1], [0, 0, 1, 1], [], []>} : vector<16x32xf32>, vector<32x256xf32>, vector<16x256xf32> -> vector<16x256xf32>
    %3 = vector.extract_strided_slice %2 {offsets = [0, 0], sizes = [16, 128], strides = [1, 1]} : vector<16x256xf32> to vector<16x128xf32>
    %4 = vector.extract_strided_slice %2 {offsets = [0, 128], sizes = [16, 128], strides = [1, 1]} : vector<16x256xf32> to vector<16x128xf32>
    %5 = arith.negf %4 : vector<16x128xf32>
    %6 = math.exp %5 : vector<16x128xf32>
    %cst_3 = arith.constant 1.000000e+00 : f32
    %7 = vector.broadcast %cst_3 : f32 to vector<16x128xf32>
    %8 = arith.addf %7, %6 : vector<16x128xf32>
    %9 = arith.divf %7, %8 : vector<16x128xf32>
    %10 = arith.mulf %4, %9 : vector<16x128xf32>
    %11 = arith.mulf %3, %10 : vector<16x128xf32>
    %c0_4 = arith.constant 0 : index
    %c0_5 = arith.constant 0 : index
    %12 = vector.load %arg2[%c0_4, %c0_5] : memref<128x32xf32, #tpu.memory_space<vmem>>, vector<128x32xf32>
    %cst_6 = arith.constant dense<0.000000e+00> : vector<16x32xf32>
    %13 = tpu.matmul %11, %12, %cst_6 {dimension_numbers = #tpu.dot_dimension_numbers<[1], [0], [0], [1], [0, 0, 1, 1], [], []>} : vector<16x128xf32>, vector<128x32xf32>, vector<16x32xf32> -> vector<16x32xf32>
    %c0_7 = arith.constant 0 : index
    %c0_8 = arith.constant 0 : index
    %14 = vector.load %arg3[%c0_7, %c0_8] : memref<16x32xf32, #tpu.memory_space<vmem>>, vector<16x32xf32>
    tpu.vector_store %arg3[%c0_7, %c0_8], %13 {strides = array<i32>} : memref<16x32xf32, #tpu.memory_space<vmem>>, vector<16x32xf32>,
    return
  }
}

</mosaic_0001>

<bundles_post_ra>
// kernel: tpu_custom_call.1
= control target key start
LH: loop header
LB: loop body
LE: loop exit
PB: predicated region body
PF: predicated region fallthrough
CT: control target
= control target key end

     0   :  { %s348_s0 = inlined_call_operand.vmem [shape: f32[16,32], index: 0, kind: input, shape index: {}]   ;;  %s349_s1 = inlined_call_operand.vmem [shape: f32[32,256], index: 1, kind: input, shape index: {}]   ;;  %s350_s2 = inlined_call_operand.vmem [shape: f32[128,32], index: 2, kind: input, shape index: {}]   ;;  %s351_s3 = inlined_call_operand.hbm [shape: f32[16,32], index: 3, kind: output, shape index: {}]  }
   0x1   :  { %v24_v0 = vld [vmem:[%s349_s1 + $0x38] sm:$0xff]  ;;  %v22_v1 = vld [vmem:[%s349_s1 + $0x28] sm:$0xff]  ;;  %v23_v3 = vld [vmem:[%s349_s1 + $0x30] sm:$0xff] }
   0x2   :  { %67 = vmatpush.msra.mxu1 %v24_v0  ;;  %v20_v2 = vld [vmem:[%s349_s1 + $0x18] sm:$0xff]  ;;  %v21_v4 = vld [vmem:[%s349_s1 + $0x20] sm:$0xff]  ;;  %44 = vmatpush.msra.mxu0 %v23_v3 }
   0x4   :  { %68 = vmatpush.msra.mxu1 %v22_v1 }
   0x5   :  { %8 = vsyncpa [#allocation3], 0  ;;  %v18_v5 = vld [vmem:[%s349_s1 + $0x8] sm:$0xff]  ;;  %v19_v6 = vld [vmem:[%s349_s1 + $0x10] sm:$0xff]  ;;  %vm25_vm0 = vcmask 261120   ;;  %45 = vmatpush.msra.mxu0 %v21_v4  ;;  %s239_s10 = smov 128  }
   0x6   :  { %69 = vmatpush.msra.mxu1 %v20_v2  ;;  %v15_v7 = vld [vmem:[%s348_s0] sm:$0xff]  ;;  %v16_v9 = vld [vmem:[%s348_s0 + $0x8] sm:$0xff]  ;;  %v135_v10 = vld [vmem:[%s350_s2 + $0x78] sm:$0xff]  ;;  %s167_s0 = sshll.u32 %s351_s3, 4  ;;  %s240_s11 = smov 8   ;;  %s168_s0 = int_to_ptr.hbm [resolvable:$true] %s167_s0 }
   0x7   :  { %v17_v8 = vld [vmem:[%s349_s1] sm:$0xff]  ;;  %46 = vmatpush.msra.mxu0 %v19_v6  ;;  %136 = vmatpush.msra.mxu2 %v135_v10  ;;  %v134_v11 = vld [vmem:[%s350_s2 + $0x70] sm:$0xff]  ;;  %v133_v12 = vld [vmem:[%s350_s2 + $0x68] sm:$0xff] }
   0x8   :  { %70 = vmatpush.msra.mxu1 %v18_v5  ;;  %185 = vmatpush.msra.mxu3 %v135_v10  ;;  %v132_v13 = vld [vmem:[%s350_s2 + $0x60] sm:$0xff]  ;;  %v131_v14 = vld [vmem:[%s350_s2 + $0x58] sm:$0xff]  ;;  %v130_v15 = vld [vmem:[%s350_s2 + $0x50] sm:$0xff] }
   0x9   :  { %181 = vmatmul.msk.f32.vlgmr.msra.gmra.mxu1 %vm25_vm0, %v15_v7  ;;  %47 = vmatpush.msra.mxu0 %v17_v8  ;;  %v129_v16 = vld [vmem:[%s350_s2 + $0x48] sm:$0xff]  ;;  %v128_v17 = vld [vmem:[%s350_s2 + $0x40] sm:$0xff]  ;;  %v127_v18 = vld [vmem:[%s350_s2 + $0x38] sm:$0xff] }
   0xa   :  { %179 = vmatmul.msk.f32.vlgmr.msra.gmra.mxu0 %vm25_vm0, %v15_v7  ;;  %137 = vmatpush.msra.mxu2 %v134_v11  ;;  %v126_v19 = vld [vmem:[%s350_s2 + $0x30] sm:$0xff]  ;;  %v125_v20 = vld [vmem:[%s350_s2 + $0x28] sm:$0xff]  ;;  %v124_v21 = vld [vmem:[%s350_s2 + $0x20] sm:$0xff] }
   0xb   :  { %186 = vmatpush.msra.mxu3 %v134_v11  ;;  %v123_v22 = vld [vmem:[%s350_s2 + $0x18] sm:$0xff]  ;;  %v122_v23 = vld [vmem:[%s350_s2 + $0x10] sm:$0xff]  ;;  %v121_v24 = vld [vmem:[%s350_s2 + $0x8] sm:$0xff] }
   0xc   :  { %138 = vmatpush.msra.mxu2 %v133_v12  ;;  %v120_v25 = vld [vmem:[%s350_s2] sm:$0xff]  ;;  %s238_s2 = smov [#allocation2]  }
   0xd   :  { %187 = vmatpush.msra.mxu3 %v133_v12  ;;  %s165_s7 = sshll.u32 %s238_s2, 4  ;;  %s166_s7 = int_to_ptr.vmem [resolvable:$true] %s165_s7 }
   0xe   :  { %139 = vmatpush.msra.mxu2 %v132_v13 }
   0xf   :  { %188 = vmatpush.msra.mxu3 %v132_v13 }
  0x10   :  { %140 = vmatpush.msra.mxu2 %v131_v14 }
  0x11   :  { %182 = vmatmul.msk.f32.gmra.mxu1 %vm25_vm0, %v16_v9  ;;  %189 = vmatpush.msra.mxu3 %v131_v14 }
  0x12   :  { %180 = vmatmul.msk.f32.gmra.mxu0 %vm25_vm0, %v16_v9  ;;  %141 = vmatpush.msra.mxu2 %v130_v15 }
  0x13   :  { %190 = vmatpush.msra.mxu3 %v130_v15 }
  0x14   :  { %142 = vmatpush.msra.mxu2 %v129_v16 }
  0x15   :  { %191 = vmatpush.msra.mxu3 %v129_v16 }
  0x16   :  { %143 = vmatpush.msra.mxu2 %v128_v17 }
  0x17   :  { %192 = vmatpush.msra.mxu3 %v128_v17 }
  0x18   :  { %144 = vmatpush.msra.mxu2 %v127_v18 }
  0x19   :  { %193 = vmatpush.msra.mxu3 %v127_v18 }
  0x1a   :  { %145 = vmatpush.msra.mxu2 %v126_v19 }
  0x1b   :  { %194 = vmatpush.msra.mxu3 %v126_v19 }
  0x1c   :  { %146 = vmatpush.msra.mxu2 %v125_v20 }
  0x1d   :  { %195 = vmatpush.msra.mxu3 %v125_v20 }
  0x1e   :  { %147 = vmatpush.msra.mxu2 %v124_v21 }
  0x1f   :  { %196 = vmatpush.msra.mxu3 %v124_v21 }
  0x20   :  { %148 = vmatpush.msra.mxu2 %v123_v22 }
  0x21   :  { %197 = vmatpush.msra.mxu3 %v123_v22 }
  0x22   :  { %149 = vmatpush.msra.mxu2 %v122_v23 }
  0x23   :  { %198 = vmatpush.msra.mxu3 %v122_v23 }
  0x24   :  { %150 = vmatpush.msra.mxu2 %v121_v24 }
  0x25   :  { %199 = vmatpush.msra.mxu3 %v121_v24 }
  0x26   :  { %151 = vmatpush.msra.mxu2 %v120_v25 }
  0x27   :  { %200 = vmatpush.msra.mxu3 %v120_v25 }
  0x86   :  { %v72_v26 = vpop.f32.mrf.mxu1 }
  0x87   :  { %v183_v27 = vmul.f32 -1.442695, %v72_v26  ;;  %v49_v43 = vpop.f32.mrf.mxu0 }
  0x89   :  { %204 = vpow2.f32 %v183_v27 }
  0x8e   :  { %v75_v28 = vpop.f32.mrf.mxu1 }
  0x8f   :  { %v205_v29 = vpop.eup %204  ;;  %v184_v30 = vmul.f32 -1.442695, %v75_v28  ;;  %v52_v57 = vpop.f32.mrf.mxu0 }
  0x90   :  { %v84_v31 = vadd.f32 1.0, %v205_v29 }
  0x91   :  { %206 = vpow2.f32 %v184_v30 }
  0x92   :  { %208 = vrcp.f32 %v84_v31  ;;  %v97_v37 = vand.u32 2147483648, %v84_v31  ;;  %v95_v39 = vand.u32 2147483647, %v84_v31  ;;  %vm91_vm2 = vweird.f32 %v84_v31 }
  0x94   :  { %v98_v42 = vor.u32 1.1754944e-38, %v97_v37  ;;  %vm96_vm4 = vcmp.eq.f32.partialorder %v95_v39, 8.507059e+37 }
  0x97   :  { %v207_v32 = vpop.eup %206 }
  0x98   :  { %v209_v33 = vpop.eup %208  ;;  %v85_v34 = vadd.f32 1.0, %v207_v32 }
  0x99   :  { %v87_v35 = vmul.f32 %v209_v33, %v84_v31  ;;  %vm92_vm1 = vweird.f32 %v209_v33 }
  0x9a   :  { %210 = vrcp.f32 %v85_v34  ;;  %vm93_vm3 = vmor %vm91_vm2, %vm92_vm1  ;;  %v112_v49 = vand.u32 2147483648, %v85_v34  ;;  %v110_v51 = vand.u32 2147483647, %v85_v34  ;;  %vm106_vm6 = vweird.f32 %v85_v34 }
  0x9b   :  { %v88_v36 = vsub.f32 1.0, %v87_v35 }
  0x9c   :  { %v113_v54 = vor.u32 1.1754944e-38, %v112_v49  ;;  %vm111_vm8 = vcmp.eq.f32.partialorder %v110_v51, 8.507059e+37 }
  0x9d   :  { %v89_v38 = vmul.f32 %v209_v33, %v88_v36 }
  0x9f   :  { %v90_v40 = vadd.f32 %v209_v33, %v89_v38 }
  0xa0   :  { %v211_v41 = vpop.eup %210 }
  0xa1   :  { %v94_v44 = vsel %vm93_vm3, %v209_v33, %v90_v40  ;;  %v102_v45 = vmul.f32 %v211_v41, %v85_v34  ;;  %vm107_vm5 = vweird.f32 %v211_v41 }
  0xa2   :  { %v99_v46 = vsel %vm96_vm4, %v98_v42, %v94_v44  ;;  %vm108_vm7 = vmor %vm106_vm6, %vm107_vm5 }
  0xa3   :  { %v116_v47 = vmul.f32 %v99_v46, %v72_v26  ;;  %v103_v48 = vsub.f32 1.0, %v102_v45 }
  0xa5   :  { %v104_v50 = vmul.f32 %v211_v41, %v103_v48  ;;  %v118_v52 = vmul.f32 %v116_v47, %v49_v43 }
  0xa7   :  { %v105_v53 = vadd.f32 %v211_v41, %v104_v50  ;;  %152 = vmatmul.f32.vlgmr.msra.gmra.mxu2 %v118_v52 }
  0xa9   :  { %v109_v55 = vsel %vm108_vm7, %v211_v41, %v105_v53 }
  0xaa   :  { %v114_v56 = vsel %vm111_vm8, %v113_v54, %v109_v55 }
  0xab   :  { %v117_v58 = vmul.f32 %v114_v56, %v75_v28 }
  0xad   :  { %v119_v59 = vmul.f32 %v117_v58, %v52_v57 }
  0xaf   :  { %155 = vmatmul.f32.vlgmr.msra.gmra.mxu3 %v119_v59 }
 0x12a   :  { %v153_v60 = vpop.f32.mrf.mxu2 }
 0x12b   :  { %159 = vst.msk [vmem:[#allocation2] sm:$0xff] %vm25_vm0, %v153_v60 }
 0x132   :  { %v156_v61 = vpop.f32.mrf.mxu3 }
 0x133   :  { %160 = vst.msk [vmem:[#allocation2 + $0x8] sm:$0xff] %vm25_vm0, %v156_v61 }
 0x134   :  { %173 = dma.vmem_to_hbm [thread:$0]  %s166_s7, 256, %s168_s0, [#allocation3], %s239_s10, %s239_s10, %s240_s11  }
 0x135   :  { %236 = dma.done.wait [#allocation3], 256  }
 0x136   :  { %237 = vsyncadd [#allocation3], 4294967040 }
 0x137   :  { %178 = vsyncpa [#allocation3], 1 }

</bundles_post_ra>
